<compile_context>
chip_gen: v5e
topology: v5e:2x2
jax: 0.10.0
libtpu: 0.0.40
codegen_flags: <defaults>
</compile_context>

<pallas_src>
import jax
import jax.numpy as jnp
from jax.experimental import pallas as pl
from jax.experimental.pallas import tpu as pltpu


def _round_up(n, m):
    return ((n + m - 1) // m) * m


def _linear_kernel(x_ref, w_ref, b_ref, o_ref):
    # x_ref: (TB, D), w_ref: (C, D) lane-dense, b_ref: (1, C) f32, o_ref: (TB, C)
    # Contract on the last dim of both operands: out[b, c] = sum_d x[b, d] * w[c, d]
    acc = jax.lax.dot_general(
        x_ref[...], w_ref[...],
        dimension_numbers=(((1,), (1,)), ((), ())),
        preferred_element_type=jnp.float32,
    )
    o_ref[...] = (acc + b_ref[...]).astype(o_ref.dtype)


def logistic_regression_forward(x, weight, bias, *, block_b=2048,
                                vmem_limit_bytes=64 << 20,
                                out_dtype=jnp.float32):
    """Forward pass of LogisticRegression (x @ weight.T + bias).

    Args:
      x:      (B, 784) float32 or bfloat16 (pass bf16 to halve HBM traffic;
              the cast should be fused into the upstream producer).
      weight: (C, 784) (PyTorch nn.Linear convention, kept lane-dense as-is).
      bias:   (C,).
      block_b: upper bound on rows per batch tile.
      vmem_limit_bytes: scoped-VMEM cap passed to Mosaic (v5e default is 16 MiB).
      out_dtype: logits dtype (keep f32; output traffic is ~1% of x traffic).
    Returns:
      (B, C) logits in out_dtype.
    """
    B, D = x.shape
    C, D2 = weight.shape
    assert D == D2, (D, D2)
    assert bias.shape == (C,), bias.shape

    # Weight is tiny (C x 784 ~ 31 KiB); match it to x's dtype so the MXU
    # contraction sees homogeneous operands.
    if weight.dtype != x.dtype:
        weight = weight.astype(x.dtype)

    itemsize = jnp.dtype(x.dtype).itemsize
    # Sublane alignment for the batch tile (packing: 8 rows f32, 16 rows bf16).
    align = {4: 8, 2: 16, 1: 32}.get(itemsize, 8)

    tb = min(block_b, _round_up(B, align))
    tb = _round_up(tb, align)
    # Keep >= 2 batch tiles whenever B allows, so the "parallel" grid axis can
    # be sharded across v7x's two TensorCores.
    if B > 2 * align:
        tb = min(tb, _round_up(pl.cdiv(B, 2), align))
    tb = max(tb, align)

    grid = (pl.cdiv(B, tb),)  # ragged last tile handled by Pallas (masked stores)

    b2d = bias.reshape(1, C).astype(jnp.float32)

    out_itemsize = jnp.dtype(out_dtype).itemsize
    cost = pl.CostEstimate(
        flops=2 * B * D * C,
        transcendentals=0,
        bytes_accessed=(x.size * itemsize + weight.size * itemsize
                        + b2d.size * 4 + B * C * out_itemsize),
    )

    return pl.pallas_call(
        _linear_kernel,
        out_shape=jax.ShapeDtypeStruct((B, C), out_dtype),
        grid=grid,
        in_specs=[
            # x: streamed per batch-tile (double-buffered by the pipeline).
            pl.BlockSpec((tb, D), lambda i: (i, 0)),
            # weight: full lane-dense block, constant index -> single buffer.
            pl.BlockSpec((C, D), lambda i: (0, 0), pipeline_mode=pl.Buffered(1)),
            # bias: full (1, C) block, constant index -> single buffer.
            pl.BlockSpec((1, C), lambda i: (0, 0), pipeline_mode=pl.Buffered(1)),
        ],
        out_specs=pl.BlockSpec((tb, C), lambda i: (i, 0)),
        compiler_params=pltpu.CompilerParams(
            # Batch tiles are independent -> shard across TCs on v7x megacore.
            dimension_semantics=("parallel",),
            vmem_limit_bytes=vmem_limit_bytes,
        ),
        cost_estimate=cost,
    )(x, weight, b2d)


if __name__ == "__main__":
    num_classes = 10
    in_features = 784
    batch = 200   # not a multiple of the tile -> exercises the ragged last tile

    key = jax.random.PRNGKey(0)
    kx, kw, kb = jax.random.split(key, 3)

    # nn.Linear default init: U(-1/sqrt(fan_in), 1/sqrt(fan_in)).
    bound = 1.0 / (in_features ** 0.5)
    weight = jax.random.uniform(kw, (num_classes, in_features),
                                minval=-bound, maxval=bound, dtype=jnp.float32)
    bias = jax.random.uniform(kb, (num_classes,),
                              minval=-bound, maxval=bound, dtype=jnp.float32)
    x = jax.random.normal(kx, (batch, in_features), dtype=jnp.float32)

    out = jax.block_until_ready(logistic_regression_forward(x, weight, bias))

    # Reference check against plain JAX (same math as torch F.linear).
    ref = x @ weight.T + bias
    assert out.shape == (batch, num_classes)
    assert jnp.allclose(out, ref, atol=1e-4, rtol=1e-4), "f32 path mismatch vs reference"

    # bf16-from-HBM path (in production the cast is fused into the upstream
    # producer; here we cast once just to exercise the half-traffic path).
    out_bf16 = jax.block_until_ready(
        logistic_regression_forward(x.astype(jnp.bfloat16),
                                    weight.astype(jnp.bfloat16), bias))
    assert jnp.allclose(out_bf16, ref, atol=5e-2, rtol=5e-2), "bf16 path mismatch"

    print("KERNEL_OK")
</pallas_src>

<mosaic_0001>
module attributes {stable_mosaic.version = 11 : i64} {
  func.func @_linear_kernel(%arg0: i32, %arg1: memref<104x784xf32, #tpu.memory_space<vmem>>, %arg2: memref<10x784xf32, #tpu.memory_space<vmem>>, %arg3: memref<1x10xf32, #tpu.memory_space<vmem>>, %arg4: memref<104x10xf32, #tpu.memory_space<vmem>>) attributes {dimension_semantics = [#tpu.dimension_semantics<parallel>], iteration_bounds = array<i64: 2>, scalar_prefetch = 0 : i64, scratch_operands = 0 : i64, tpu.core_type = #tpu.core_type<tc>, window_params = [{transform_indices = @transform_0, window_bounds = array<i64: 104, 784>}, {pipeline_mode = #tpu.pipeline_mode<synchronous>, transform_indices = @transform_1, window_bounds = array<i64: 10, 784>}, {pipeline_mode = #tpu.pipeline_mode<synchronous>, transform_indices = @transform_2, window_bounds = array<i64: 1, 10>}, {transform_indices = @transform_3, window_bounds = array<i64: 104, 10>}]} {
    %c0 = arith.constant 0 : index
    %c0_0 = arith.constant 0 : index
    %0 = vector.load %arg1[%c0, %c0_0] : memref<104x784xf32, #tpu.memory_space<vmem>>, vector<104x784xf32>
    %c0_1 = arith.constant 0 : index
    %c0_2 = arith.constant 0 : index
    %1 = vector.load %arg2[%c0_1, %c0_2] : memref<10x784xf32, #tpu.memory_space<vmem>>, vector<10x784xf32>
    %cst = arith.constant dense<0.000000e+00> : vector<104x10xf32>
    %2 = tpu.matmul %0, %1, %cst {dimension_numbers = #tpu.dot_dimension_numbers<[1], [1], [0], [0], [0, 0, 1, 0], [], []>} : vector<104x784xf32>, vector<10x784xf32>, vector<104x10xf32> -> vector<104x10xf32>
    %c0_3 = arith.constant 0 : index
    %c0_4 = arith.constant 0 : index
    %3 = vector.load %arg3[%c0_3, %c0_4] : memref<1x10xf32, #tpu.memory_space<vmem>>, vector<1x10xf32>
    %4 = vector.broadcast %3 : vector<1x10xf32> to vector<104x10xf32>
    %5 = arith.addf %2, %4 : vector<104x10xf32>
    %c0_5 = arith.constant 0 : index
    %c0_6 = arith.constant 0 : index
    %6 = vector.load %arg4[%c0_5, %c0_6] : memref<104x10xf32, #tpu.memory_space<vmem>>, vector<104x10xf32>
    tpu.vector_store %arg4[%c0_5, %c0_6], %5 {strides = array<i32>} : memref<104x10xf32, #tpu.memory_space<vmem>>, vector<104x10xf32>,
    return
  }
  func.func @transform_0(%arg0: i32) -> (i32, i32) {
    %c0_i32 = arith.constant 0 : i32
    %c0_i32_0 = arith.constant 0 : i32
    return %arg0, %c0_i32 : i32, i32
  }
  func.func @transform_1(%arg0: i32) -> (i32, i32) {
    %c0_i32 = arith.constant 0 : i32
    %c0_i32_0 = arith.constant 0 : i32
    %c0_i32_1 = arith.constant 0 : i32
    return %c0_i32, %c0_i32_0 : i32, i32
  }
  func.func @transform_2(%arg0: i32) -> (i32, i32) {
    %c0_i32 = arith.constant 0 : i32
    %c0_i32_0 = arith.constant 0 : i32
    %c0_i32_1 = arith.constant 0 : i32
    return %c0_i32, %c0_i32_0 : i32, i32
  }
  func.func @transform_3(%arg0: i32) -> (i32, i32) {
    %c0_i32 = arith.constant 0 : i32
    %c0_i32_0 = arith.constant 0 : i32
    return %arg0, %c0_i32 : i32, i32
  }
}

</mosaic_0001>

<bundles_post_ra>
// kernel: tpu_custom_call.1
= control target key start
LH: loop header
LB: loop body
LE: loop exit
PB: predicated region body
PF: predicated region fallthrough
CT: control target
= control target key end

     0   :  { %8 = vsyncpa [#allocation3], 0  ;;  %s1854_s0 = inlined_call_operand.hbm [shape: f32[200,784], index: 0, kind: input, shape index: {}]   ;;  %s1855_s1 = inlined_call_operand.hbm [shape: f32[10,784], index: 1, kind: input, shape index: {}]   ;;  %s1856_s2 = inlined_call_operand.vmem [shape: f32[1,10], index: 2, kind: input, shape index: {}]   ;;  %s1857_s3 = inlined_call_operand.vmem [shape: f32[200,10], index: 3, kind: output, shape index: {}]  }
   0x1   :  { %10 = vsyncpa [#allocation3 + $0x1], 0 }
   0x2   :  { %11 = vsyncpa [#allocation5], 0  ;;  %s1441_s12 = smov 0   ;;  %s1443_s13 = smov 0  }
   0x3   :  { %s1445_s14 = smov 0   ;;  %s1447_s15 = smov 0  }
   0x4 LB: > { %s1460_s16 = sadd.s32 4294967295, %s1381_s15   ;;  %s1463_s17 = sadd.s32 1, %s1381_s15   ;;  %s1381_s15 = sphi %s1447_s15, %s1874_s15   ;;  %s1377_s14 = sphi %s1445_s14, %s1873_s14   ;;  %s1373_s13 = sphi %s1443_s13, %s1872_s13   ;;  %s1369_s12 = sphi %s1441_s12, %s1871_s12  }
   0x5   : > { %s21_s18 = ssub.s32 %s1381_s15, %s1463_s17  ;;  %s24_s19 = sadd.s32 1, %s1377_s14 }
   0x6   : > { %p22_p0 = scmp.eq.s32.totalorder %s21_s18, 0  ;;  %p31_p1 = scmp.ne.s32.totalorder %s1377_s14, %s1373_s13 }
   0x7   : > { %p32_p2 = scmp.eq.s32.totalorder %s1381_s15, 0  ;;  %p37_p3 = scmp.ne.s32.totalorder %s1373_s13, %s1369_s12 }
   0x8   : > { %s1473_s20 = scalar_select %p22_p0, %s1377_s14, %s24_s19  }
   0x9   : > { %p1475_p4 = por %p32_p2, %p31_p1  ;;  %p1858_p5 = scmp.eq.s32.totalorder %s1460_s16, 0 }
   0xa   : > { %p103_p6 = scmp.eq.s32.totalorder %s1460_s16, 1  ;;  %p1073_p7 = scmp.ge.s32.totalorder %s1381_s15, 1 }
   0xb   : > { %p1484_p8 = por %p1858_p5, %p37_p3  ;;  %p116_p9 = scmp.lt.s32.totalorder %s1381_s15, 3 }
   0xc   : > { %p1489_p10 = por %p103_p6, %p31_p1  ;;  %s127_s27 = sshll.u32 %s1855_s1, 4  ;;  %s128_s27 = int_to_ptr.hbm [resolvable:$true] %s127_s27 }
   0xd   : > { %p1493_p11 = pnand %p1073_p7, %p116_p9  ;;  %s1415_s28 = smov [#allocation4]  }
   0xe   : > { %s129_s29 = sshll.u32 %s1415_s28, 4  ;;  %s1416_s30 = smov 896   ;;  %s130_s29 = int_to_ptr.vmem [resolvable:$true] %s129_s29 }
   0xf   : > { %p1126_p12 = pneg %p1493_p11  ;;  %s1417_s4 = smov 56  }
  0x10   : > { %p1075_p0 = scmp.ge.s32.totalorder %s1381_s15, 2 }
  0x11   : > { %p1127_p13 = pnand %p1126_p12, %p1858_p5 }
  0x12   : > { %142 = sbr.rel (%p1075_p0) target bundleno = 65 (0x41), region = 24 }
  0x13   : > { %1129 = dma.hbm_to_vmem [thread:$0]  (!%p1127_p13), %s128_s27, 1792, %s130_s29, [#allocation5], %s1416_s30, %s1416_s30, %s1417_s4  }
  0x17   : > { %145 = sbr.rel (!%p1475_p4) target bundleno = 65 (0x41), region = 28  ;;  %s146_s5 = sand.u32 (%p1475_p4), 1, %s1377_s14  }
  0x18   : > { %s151_s6 = smul.u32 (%p1475_p4), 13, %s1381_s15  ;;  %s1509_s12 = scalar_lea.sflag (%p1475_p4), [#allocation3], %s146_s5 }
  0x19   : > { %s1117_s7 = smul.u32 (%p1475_p4), 728, %s146_s5 }
  0x1a   : > { %s152_s8 = ssub.s32 (%p1475_p4), 25, %s151_s6 }
  0x1b   : > { %p153_p1 = scmp.lt.s32.totalorder (%p1475_p4), %s152_s8, 13  ;;  %s150_s18 = scalar_lea.vmem (%p1475_p4), [#allocation2], %s1117_s7 }
  0x1d   : > { %s1876_s8 = smov (!%p153_p1, %s152_s8), 13 }
  0x1e   : > { %s1077_s9 = smul.u32 56, %s1876_s8 }
  0x20   : > { %s157_s10 = ssub.s32 728, %s1077_s9 }
  0x21   : > { %s158_s11 = sshll.u32 %s157_s10, 4 }
  0x22   : > { %159 = vsyncadd %s1509_s12, %s158_s11  ;;  %p1512_p2 = scmp.ne.s32.totalorder %s1077_s9, 0  ;;  %s1131_s21 = smul.u32 728, %s1381_s15 }
  0x23   : > { %s1517_s25 = sshll.u32 %s150_s18, 4  ;;  %s1519_s26 = smul.u32 896, %s1876_s8  ;;  %s168_s25 = int_to_ptr.vmem [resolvable:$true] %s1517_s25 }
  0x24   : > { %s163_s29 = scalar_lea.hbm %s1854_s0, %s1131_s21  ;;  %s1283_s10 = scalar_lea.hbm %s1854_s0, 1400 }
  0x25   : > { %s165_s30 = sshll.u32 %s163_s29, 4  ;;  %s1274_s15 = sshrl.u32 %s1519_s26, 4  ;;  %s1525_s30 = int_to_ptr.hbm [resolvable:$true] %s165_s30 }
  0x26   : > { %s1272_s4 = sshra.s32 %s1525_s30, 4  ;;  %s1310_s5 = sshll.u32 %s1274_s15, 4  ;;  %s1273_s4 = int_to_ptr.hbm [resolvable:$true] %s1272_s4 }
  0x27   : > { %p1276_p3 = scmp.ne.s32.totalorder %s1310_s5, %s1519_s26  ;;  %s1277_s6 = sadd.s32 1, %s1274_s15 }
  0x28   : > { %p1284_p9 = scmp.lt.s32.totalorder %s1273_s4, %s1854_s0 }
  0x29   : > { %s1878_s6 = smov (!%p1276_p3, %s1277_s6), %s1274_s15 }
  0x2a   : > { %s1279_s7 = scalar_lea.hbm %s1273_s4, %s1878_s6 }
  0x2b   : > { %p1280_p4 = scmp.ne.s32.totalorder %s1273_s4, %s1279_s7  ;;  %p1285_p12 = scmp.lt.s32.totalorder %s1283_s10, %s1279_s7 }
  0x2d   : > { %p1281_p6 = pnand %p1280_p4, %p1512_p2  ;;  %p1286_p13 = por %p1285_p12, %p1284_p9 }
  0x2f   : > { %p1282_p7 = pneg %p1281_p6 }
  0x31   : > { %p1287_p0 = pnand %p1286_p13, %p1282_p7 }
  0x33   : > { %1290 = shalt.err (!%p1287_p0)
}
  0x34   : > { %s1291_s21 = sshra.s32 %s168_s25, 4  ;;  %s1418_s28 = smov [#allocation2]   ;;  %s1292_s21 = int_to_ptr.vmem [resolvable:$true] %s1291_s21 }
  0x35   : > { %s1298_s27 = scalar_lea.vmem %s1292_s21, %s1878_s6  ;;  %s1302_s29 = scalar_lea.vmem %s1418_s28, 1456 }
  0x36   : > { %p1299_p1 = scmp.ne.s32.totalorder %s1292_s21, %s1298_s27  ;;  %p1304_p6 = scmp.lt.s32.totalorder %s1302_s29, %s1298_s27 }
  0x38   : > { %p1300_p3 = pnand %p1299_p1, %p1512_p2 }
  0x3a   : > { %p1301_p4 = pneg %p1300_p3 }
  0x3c   : > { %p1306_p5 = pnand %p1304_p6, %p1301_p4 }
  0x3e   : > { %1309 = shalt.err (!%p1306_p5)
}
  0x3f   : > { %s1419_s4 = smov 896   ;;  %s1420_s15 = smov 56  }
  0x40   : > { %173 = dma.hbm_to_vmem [thread:$0]  (%p1512_p2), %s1525_s30, %s1519_s26, %s168_s25, %s1509_s12, %s1419_s4, %s1419_s4, %s1420_s15  }
  0x41 PF: > { %179 = sbr.rel (%p1493_p11) target bundleno = 454 (0x1c6), region = 32  ;;  %s1552_s5 = sand.u32 (!%p1493_p11), 1, %s1373_s13  }
  0x42   : > { %s1119_s6 = smul.u32 (!%p1493_p11), 728, %s1552_s5  ;;  %s182_s7 = scalar_lea.sflag (!%p1493_p11), [#allocation3], %s1552_s5 }
  0x44   : > { %s1556_s8 = scalar_lea.vmem (!%p1493_p11), [#allocation2], %s1119_s6 }
  0x46   : > { %1360 = dma.done.wait (%p1484_p8), %s182_s7, 11648  }
  0x47   : > { %1362 = vsyncadd (%p1484_p8), %s182_s7, 4294955648  ;;  %p1864_p5 = scmp.eq.s32.totalorder %s1460_s16, 0 }
  0x49   : > { %1364 = dma.done.wait (%p1864_p5), [#allocation5], 1792   ;;  %p1865_p11 = pmov %p1864_p5 }
  0x4a   : > { %v322_v0 = vld [vmem:[#allocation4 + $0x38] sm:$0x3]  ;;  %v324_v1 = vld [vmem:[#allocation4 + $0x48] sm:$0x3]  ;;  %v323_v2 = vld [vmem:[#allocation4 + $0x40] sm:$0x3] }
  0x4b   : > { %1366 = vsyncadd (%p1865_p11), [#allocation5], 4294965504  ;;  %393 = vmatpush.xpose.msra.mxu0 %v322_v0  ;;  %1111 = vmatpush.xpose.msra.mxu3 %v322_v0  ;;  %v315_v3 = vld [vmem:[#allocation4] sm:$0xff]  ;;  %v317_v4 = vld [vmem:[#allocation4 + $0x10] sm:$0xff]  ;;  %vm333_vm0 = vcmask 130048   ;;  %s1120_s12 = smul.u32 104, %s1552_s5 }
  0x4c   : > { %505 = vmatpush.xpose.msra.mxu2 %v324_v1  ;;  %449 = vmatpush.xpose.msra.mxu1 %v323_v2  ;;  %v316_v5 = vld [vmem:[#allocation4 + $0x8] sm:$0xff]  ;;  %v294_v8 = vld [vmem:[%s1556_s8 + $0x230] sm:$0xff]  ;;  %v225_v10 = vld [vmem:[%s1556_s8 + $0x8] sm:$0xff]  ;;  %vm771_vm1 = vcmask 80896   ;;  %s792_s25 = smul.u32 (%p1489_p10), 13, %s1460_s16 }
  0x4d   : > { %v328_v6 = vld [vmem:[#allocation4 + $0x68] sm:$0x3]  ;;  %v226_v9 = vld [vmem:[%s1556_s8 + $0x10] sm:$0xff]  ;;  %v301_v14 = vld [vmem:[%s1556_s8 + $0x268] sm:$0xff]  ;;  %s1719_s19 = scalar_lea.vmem [#allocation6], %s1120_s12   ;;  %s1110_s26 = smul.u32 (%p1489_p10), 104, %s1460_s16 }
  0x4e   : > { %v224_v7 = vld [vmem:[%s1556_s8] sm:$0xff]  ;;  %v326_v11 = vld [vmem:[#allocation4 + $0x58] sm:$0x3]  ;;  %v327_v12 = vld [vmem:[#allocation4 + $0x60] sm:$0x3]  ;;  %s793_s30 = ssub.s32 (%p1489_p10), 25, %s792_s25 }
  0x4f   : > { %394 = vmatpush.xpose.msra.mxu0 %v315_v3  ;;  %1112 = vmatpush.xpose.msra.mxu3 %v315_v3  ;;  %v231_v13 = vld [vmem:[%s1556_s8 + $0x38] sm:$0xff]  ;;  %v233_v15 = vld [vmem:[%s1556_s8 + $0x48] sm:$0xff]  ;;  %v232_v16 = vld [vmem:[%s1556_s8 + $0x40] sm:$0xff]  ;;  %p794_p8 = scmp.lt.s32.totalorder (%p1489_p10), %s793_s30, 13  ;;  %s1765_s11 = scalar_lea.vmem (%p1489_p10), %s1857_s3, %s1110_s26  }
  0x50   : > { %506 = vmatpush.xpose.msra.mxu2 %v317_v4  ;;  %450 = vmatpush.xpose.msra.mxu1 %v316_v5  ;;  %v321_v17 = vld [vmem:[#allocation4 + $0x30] sm:$0xff]  ;;  %v319_v18 = vld [vmem:[#allocation4 + $0x20] sm:$0xff]  ;;  %v320_v19 = vld [vmem:[#allocation4 + $0x28] sm:$0xff] }
  0x51   : > { %v238_v20 = vld [vmem:[%s1556_s8 + $0x70] sm:$0xff]  ;;  %v308_v21 = vld [vmem:[%s1556_s8 + $0x2a0] sm:$0xff]  ;;  %v239_v23 = vld [vmem:[%s1556_s8 + $0x78] sm:$0xff] }
  0x52   : > { %395 = vmatmul.f32.vlgmr.msra.gmra.mxu0 %v224_v7  ;;  %425 = vmatmul.f32.vlgmr.msra.gmra.mxu3 %v294_v8  ;;  %v240_v22 = vld [vmem:[%s1556_s8 + $0x80] sm:$0xff]  ;;  %v245_v24 = vld [vmem:[%s1556_s8 + $0xa8] sm:$0xff]  ;;  %v295_v25 = vld [vmem:[%s1556_s8 + $0x238] sm:$0xff] }
  0x53   : > { %1113 = vmatpush.xpose.msrb.mxu3 %v323_v2  ;;  %507 = vmatmul.f32.vlgmr.msra.gmra.mxu2 %v226_v9  ;;  %v247_v26 = vld [vmem:[%s1556_s8 + $0xb8] sm:$0xff]  ;;  %v246_v27 = vld [vmem:[%s1556_s8 + $0xb0] sm:$0xff]  ;;  %v325_v28 = vld [vmem:[#allocation4 + $0x50] sm:$0x3] }
  0x54   : > { %1083 = vmatpush.xpose.msk.msrb.mxu2 %vm333_vm0, %v328_v6  ;;  %451 = vmatmul.f32.vlgmr.msra.gmra.mxu1 %v225_v10  ;;  %v318_v29 = vld [vmem:[#allocation4 + $0x18] sm:$0xff]  ;;  %v252_v30 = vld [vmem:[%s1556_s8 + $0xe0] sm:$0xff]  ;;  %v259_v34 = vld [vmem:[%s1556_s8 + $0x118] sm:$0xff] }
  0x55   : > { %617 = vmatpush.xpose.msrb.mxu0 %v326_v11  ;;  %673 = vmatpush.xpose.msrb.mxu1 %v327_v12  ;;  %v302_v31 = vld [vmem:[%s1556_s8 + $0x270] sm:$0xff]  ;;  %v253_v33 = vld [vmem:[%s1556_s8 + $0xe8] sm:$0xff]  ;;  %v260_v37 = vld [vmem:[%s1556_s8 + $0x120] sm:$0xff] }
  0x56   : > { %v254_v32 = vld [vmem:[%s1556_s8 + $0xf0] sm:$0xff]  ;;  %v309_v35 = vld [vmem:[%s1556_s8 + $0x2a8] sm:$0xff]  ;;  %v296_v39 = vld [vmem:[%s1556_s8 + $0x240] sm:$0xff] }
  0x57   : > { %1114 = vmatpush.xpose.msrb.mxu3 %v316_v5  ;;  %v261_v36 = vld [vmem:[%s1556_s8 + $0x128] sm:$0xff]  ;;  %v266_v38 = vld [vmem:[%s1556_s8 + $0x150] sm:$0xff]  ;;  %v268_v40 = vld [vmem:[%s1556_s8 + $0x160] sm:$0xff] }
  0x58   : > { %1084 = vmatpush.xpose.msk.msrb.mxu2 %vm333_vm0, %v321_v17  ;;  %v267_v41 = vld [vmem:[%s1556_s8 + $0x158] sm:$0xff]  ;;  %v273_v42 = vld [vmem:[%s1556_s8 + $0x188] sm:$0xff]  ;;  %v274_v45 = vld [vmem:[%s1556_s8 + $0x190] sm:$0xff] }
  0x59   : > { %618 = vmatpush.xpose.msrb.mxu0 %v319_v18  ;;  %674 = vmatpush.xpose.msrb.mxu1 %v320_v19  ;;  %v303_v43 = vld [vmem:[%s1556_s8 + $0x278] sm:$0xff]  ;;  %v280_v46 = vld [vmem:[%s1556_s8 + $0x1c0] sm:$0xff]  ;;  %v310_v47 = vld [vmem:[%s1556_s8 + $0x2b0] sm:$0xff] }
  0x5a   : > { %398 = vmatmul.f32.gmra.mxu0 %v231_v13  ;;  %428 = vmatmul.f32.gmra.mxu3 %v301_v14  ;;  %v275_v44 = vld [vmem:[%s1556_s8 + $0x198] sm:$0xff]  ;;  %v282_v48 = vld [vmem:[%s1556_s8 + $0x1d0] sm:$0xff]  ;;  %v281_v49 = vld [vmem:[%s1556_s8 + $0x1c8] sm:$0xff] }
  0x5b   : > { %1115 = vmatpush.xpose.msra.mxu3 %v324_v1  ;;  %510 = vmatmul.f32.gmra.mxu2 %v233_v15  ;;  %v287_v50 = vld [vmem:[%s1556_s8 + $0x1f8] sm:$0xff]  ;;  %v289_v52 = vld [vmem:[%s1556_s8 + $0x208] sm:$0xff]  ;;  %v288_v53 = vld [vmem:[%s1556_s8 + $0x200] sm:$0xff] }
  0x5c   : > { %454 = vmatmul.f32.gmra.mxu1 %v232_v16  ;;  %v227_v51 = vld [vmem:[%s1556_s8 + $0x18] sm:$0xff]  ;;  %v234_v54 = vld [vmem:[%s1556_s8 + $0x50] sm:$0xff]  ;;  %v228_v55 = vld [vmem:[%s1556_s8 + $0x20] sm:$0xff] }
  0x5d   : > { %v230_v56 = vld [vmem:[%s1556_s8 + $0x30] sm:$0xff]  ;;  %v229_v57 = vld [vmem:[%s1556_s8 + $0x28] sm:$0xff]  ;;  %v235_v59 = vld [vmem:[%s1556_s8 + $0x58] sm:$0xff] }
  0x5e   : > { %v241_v58 = vld [vmem:[%s1556_s8 + $0x88] sm:$0xff]  ;;  %v236_v61 = vld [vmem:[%s1556_s8 + $0x60] sm:$0xff]  ;;  %v242_v63 = vld [vmem:[%s1556_s8 + $0x90] sm:$0xff] }
  0x5f   : > { %1116 = vmatpush.xpose.msra.mxu3 %v317_v4  ;;  %v237_v60 = vld [vmem:[%s1556_s8 + $0x68] sm:$0xff]  ;;  %v248_v62 = vld [vmem:[%s1556_s8 + $0xc0] sm:$0xff]  ;;  %v243_v1 = vld [vmem:[%s1556_s8 + $0x98] sm:$0xff] }
  0x60   : > { %v244_v0 = vld [vmem:[%s1556_s8 + $0xa0] sm:$0xff]  ;;  %v255_v2 = vld [vmem:[%s1556_s8 + $0xf8] sm:$0xff]  ;;  %v249_v3 = vld [vmem:[%s1556_s8 + $0xc8] sm:$0xff] }
  0x61   : > { %v251_v4 = vld [vmem:[%s1556_s8 + $0xd8] sm:$0xff]  ;;  %v250_v5 = vld [vmem:[%s1556_s8 + $0xd0] sm:$0xff]  ;;  %v256_v7 = vld [vmem:[%s1556_s8 + $0x100] sm:$0xff] }
  0x62   : > { %401 = vmatmul.f32.gmra.mxu0 %v238_v20  ;;  %431 = vmatmul.f32.gmra.mxu3 %v308_v21  ;;  %v262_v6 = vld [vmem:[%s1556_s8 + $0x130] sm:$0xff]  ;;  %v257_v9 = vld [vmem:[%s1556_s8 + $0x108] sm:$0xff]  ;;  %v263_v11 = vld [vmem:[%s1556_s8 + $0x138] sm:$0xff] }
  0x63   : > { %513 = vmatmul.f32.gmra.mxu2 %v240_v22  ;;  %v258_v8 = vld [vmem:[%s1556_s8 + $0x110] sm:$0xff]  ;;  %v269_v10 = vld [vmem:[%s1556_s8 + $0x168] sm:$0xff]  ;;  %v264_v13 = vld [vmem:[%s1556_s8 + $0x140] sm:$0xff] }
  0x64   : > { %457 = vmatmul.f32.gmra.mxu1 %v239_v23  ;;  %v265_v12 = vld [vmem:[%s1556_s8 + $0x148] sm:$0xff]  ;;  %v276_v16 = vld [vmem:[%s1556_s8 + $0x1a0] sm:$0xff]  ;;  %v270_v17 = vld [vmem:[%s1556_s8 + $0x170] sm:$0xff] }
  0x65   : > { %v1641_v14 = vld [vmem:[%s1856_s2] ss:$0 sm:$0xff]  ;;  %v271_v21 = vld [vmem:[%s1556_s8 + $0x178] sm:$0xff] }
  0x66   : > { %v272_v20 = vld [vmem:[%s1556_s8 + $0x180] sm:$0xff] }
  0x6a   : > { %404 = vmatmul.f32.gmra.mxu0 %v245_v24  ;;  %481 = vmatmul.f32.vlgmr.msrb.gmra.mxu3 %v295_v25 }
  0x6b   : > { %516 = vmatmul.f32.gmra.mxu2 %v247_v26  ;;  %561 = vmatpush.xpose.msrb.mxu3 %v325_v28  ;;  %v277_v28 = vld [vmem:[%s1556_s8 + $0x1a8] sm:$0xff] }
  0x6c   : > { %460 = vmatmul.f32.gmra.mxu1 %v246_v27  ;;  %v283_v27 = vld [vmem:[%s1556_s8 + $0x1d8] sm:$0xff] }
  0x6f   : > { %562 = vmatpush.xpose.msrb.mxu3 %v318_v29 }
  0x72   : > { %407 = vmatmul.f32.gmra.mxu0 %v252_v30  ;;  %484 = vmatmul.f32.gmra.mxu3 %v302_v31  ;;  %v279_v31 = vld [vmem:[%s1556_s8 + $0x1b8] sm:$0xff] }
  0x73   : > { %519 = vmatmul.f32.gmra.mxu2 %v254_v32  ;;  %v278_v32 = vld [vmem:[%s1556_s8 + $0x1b0] sm:$0xff] }
  0x74   : > { %463 = vmatmul.f32.gmra.mxu1 %v253_v33 }
  0x7a   : > { %410 = vmatmul.f32.gmra.mxu0 %v259_v34  ;;  %487 = vmatmul.f32.gmra.mxu3 %v309_v35 }
  0x7b   : > { %522 = vmatmul.f32.gmra.mxu2 %v261_v36 }
  0x7c   : > { %466 = vmatmul.f32.gmra.mxu1 %v260_v37 }
  0x82   : > { %413 = vmatmul.f32.gmra.mxu0 %v266_v38  ;;  %537 = vmatmul.f32.vlgmr.msra.gmra.mxu3 %v296_v39  ;;  %v290_v38 = vld [vmem:[%s1556_s8 + $0x210] sm:$0xff]  ;;  %v284_v39 = vld [vmem:[%s1556_s8 + $0x1e0] sm:$0xff] }
  0x83   : > { %525 = vmatmul.f32.gmra.mxu2 %v268_v40 }
  0x84   : > { %469 = vmatmul.f32.gmra.mxu1 %v267_v41 }
  0x8a   : > { %416 = vmatmul.f32.gmra.mxu0 %v273_v42  ;;  %540 = vmatmul.f32.gmra.mxu3 %v303_v43  ;;  %v286_v42 = vld [vmem:[%s1556_s8 + $0x1f0] sm:$0xff]  ;;  %v285_v43 = vld [vmem:[%s1556_s8 + $0x1e8] sm:$0xff] }
  0x8b   : > { %528 = vmatmul.f32.gmra.mxu2 %v275_v44 }
  0x8c   : > { %472 = vmatmul.f32.gmra.mxu1 %v274_v45 }
  0x92   : > { %419 = vmatmul.f32.gmra.mxu0 %v280_v46  ;;  %543 = vmatmul.f32.gmra.mxu3 %v310_v47 }
  0x93   : > { %531 = vmatmul.f32.gmra.mxu2 %v282_v48 }
  0x94   : > { %475 = vmatmul.f32.gmra.mxu1 %v281_v49  ;;  %v297_v49 = vld [vmem:[%s1556_s8 + $0x248] sm:$0xff] }
  0x9a   : > { %422 = vmatmul.f32.gmra.mxu0 %v287_v50  ;;  %563 = vmatmul.f32.vlgmr.msrb.gmra.mxu3 %v227_v51  ;;  %v291_v50 = vld [vmem:[%s1556_s8 + $0x218] sm:$0xff] }
  0x9b   : > { %534 = vmatmul.f32.gmra.mxu2 %v289_v52 }
  0x9c   : > { %478 = vmatmul.f32.gmra.mxu1 %v288_v53  ;;  %v293_v53 = vld [vmem:[%s1556_s8 + $0x228] sm:$0xff] }
  0xa2   : > { %566 = vmatmul.f32.gmra.mxu3 %v234_v54  ;;  %619 = vmatmul.f32.vlgmr.msrb.gmra.mxu0 %v228_v55  ;;  %v292_v54 = vld [vmem:[%s1556_s8 + $0x220] sm:$0xff] }
  0xa3   : > { %1085 = vmatmul.msk.f32.vlgmr.msrb.gmra.mxu2 %vm333_vm0, %v230_v56 }
  0xa4   : > { %675 = vmatmul.f32.vlgmr.msrb.gmra.mxu1 %v229_v57 }
  0xaa   : > { %569 = vmatmul.f32.gmra.mxu3 %v241_v58  ;;  %622 = vmatmul.f32.gmra.mxu0 %v235_v59 }
  0xab   : > { %1086 = vmatmul.msk.f32.gmra.mxu2 %vm333_vm0, %v237_v60 }
  0xac   : > { %678 = vmatmul.f32.gmra.mxu1 %v236_v61 }
  0xb2   : > { %572 = vmatmul.f32.gmra.mxu3 %v248_v62  ;;  %625 = vmatmul.f32.gmra.mxu0 %v242_v63  ;;  %v304_v62 = vld [vmem:[%s1556_s8 + $0x280] sm:$0xff]  ;;  %v298_v63 = vld [vmem:[%s1556_s8 + $0x250] sm:$0xff] }
  0xb3   : > { %1087 = vmatmul.msk.f32.gmra.mxu2 %vm333_vm0, %v244_v0 }
  0xb4   : > { %681 = vmatmul.f32.gmra.mxu1 %v243_v1 }
  0xba   : > { %575 = vmatmul.f32.gmra.mxu3 %v255_v2  ;;  %628 = vmatmul.f32.gmra.mxu0 %v249_v3  ;;  %v300_v2 = vld [vmem:[%s1556_s8 + $0x260] sm:$0xff]  ;;  %v299_v3 = vld [vmem:[%s1556_s8 + $0x258] sm:$0xff] }
  0xbb   : > { %1088 = vmatmul.msk.f32.gmra.mxu2 %vm333_vm0, %v251_v4 }
  0xbc   : > { %684 = vmatmul.f32.gmra.mxu1 %v250_v5 }
  0xc2   : > { %578 = vmatmul.f32.gmra.mxu3 %v262_v6  ;;  %631 = vmatmul.f32.gmra.mxu0 %v256_v7 }
  0xc3   : > { %1089 = vmatmul.msk.f32.gmra.mxu2 %vm333_vm0, %v258_v8 }
  0xc4   : > { %687 = vmatmul.f32.gmra.mxu1 %v257_v9 }
  0xca   : > { %581 = vmatmul.f32.gmra.mxu3 %v269_v10  ;;  %634 = vmatmul.f32.gmra.mxu0 %v263_v11  ;;  %v311_v11 = vld [vmem:[%s1556_s8 + $0x2b8] sm:$0xff] }
  0xcb   : > { %1090 = vmatmul.msk.f32.gmra.mxu2 %vm333_vm0, %v265_v12  ;;  %v305_v12 = vld [vmem:[%s1556_s8 + $0x288] sm:$0xff] }
  0xcc   : > { %690 = vmatmul.f32.gmra.mxu1 %v264_v13 }
  0xcf   : > { %v396_v15 = vpop.f32.mrf.mxu0 }
  0xd0   : > { %v397_v18 = vadd.f32 %v1641_v14, %v396_v15 }
  0xd1   : > { %v452_v19 = vpop.f32.mrf.mxu1 }
  0xd2   : > { %v453_v22 = vadd.f32 %v452_v19, %v397_v18  ;;  %584 = vmatmul.f32.gmra.mxu3 %v276_v16  ;;  %637 = vmatmul.f32.gmra.mxu0 %v270_v17  ;;  %v307_v16 = vld [vmem:[%s1556_s8 + $0x298] sm:$0xff]  ;;  %v306_v17 = vld [vmem:[%s1556_s8 + $0x290] sm:$0xff] }
  0xd3   : > { %1091 = vmatmul.msk.f32.gmra.mxu2 %vm333_vm0, %v272_v20 }
  0xd4   : > { %693 = vmatmul.f32.gmra.mxu1 %v271_v21 }
  0xd5   : > { %v426_v23 = vpop.f32.mrf.mxu3 }
  0xd6   : > { %v508_v24 = vpop.f32.mrf.mxu2  ;;  %v427_v56 = vadd.f32 %v1641_v14, %v426_v23 }
  0xd7   : > { %v1649_v25 = vadd.f32 %v508_v24, %v453_v22  ;;  %v399_v26 = vpop.f32.mrf.mxu0 }
  0xd8   : > { %v400_v29 = vadd.f32 %v1641_v14, %v399_v26  ;;  %v312_v26 = vld [vmem:[%s1556_s8 + $0x2c0] sm:$0xff] }
  0xd9   : > { %v455_v30 = vpop.f32.mrf.mxu1 }
  0xda   : > { %v456_v33 = vadd.f32 %v455_v30, %v400_v29  ;;  %587 = vmatmul.f32.gmra.mxu3 %v283_v27  ;;  %640 = vmatmul.f32.gmra.mxu0 %v277_v28  ;;  %v314_v29 = vld [vmem:[%s1556_s8 + $0x2d0] sm:$0xff]  ;;  %v313_v30 = vld [vmem:[%s1556_s8 + $0x2c8] sm:$0xff] }
  0xdb   : > { %1092 = vmatmul.msk.f32.gmra.mxu2 %vm333_vm0, %v279_v31 }
  0xdc   : > { %696 = vmatmul.f32.gmra.mxu1 %v278_v32 }
  0xdd   : > { %v429_v34 = vpop.f32.mrf.mxu3 }
  0xde   : > { %v511_v35 = vpop.f32.mrf.mxu2  ;;  %v430_v5 = vadd.f32 %v1641_v14, %v429_v34 }
  0xdf   : > { %v1657_v36 = vadd.f32 %v511_v35, %v456_v33  ;;  %v402_v37 = vpop.f32.mrf.mxu0 }
  0xe0   : > { %v403_v40 = vadd.f32 %v1641_v14, %v402_v37 }
  0xe1   : > { %v458_v41 = vpop.f32.mrf.mxu1 }
  0xe2   : > { %v459_v44 = vadd.f32 %v458_v41, %v403_v40  ;;  %590 = vmatmul.f32.gmra.mxu3 %v290_v38  ;;  %643 = vmatmul.f32.gmra.mxu0 %v284_v39 }
  0xe3   : > { %1093 = vmatmul.msk.f32.gmra.mxu2 %vm333_vm0, %v286_v42 }
  0xe4   : > { %699 = vmatmul.f32.gmra.mxu1 %v285_v43 }
  0xe5   : > { %v432_v45 = vpop.f32.mrf.mxu3 }
  0xe6   : > { %v514_v46 = vpop.f32.mrf.mxu2  ;;  %v433_v19 = vadd.f32 %v1641_v14, %v432_v45 }
  0xe7   : > { %v1665_v47 = vadd.f32 %v514_v46, %v459_v44  ;;  %v405_v48 = vpop.f32.mrf.mxu0 }
  0xe8   : > { %v406_v51 = vadd.f32 %v1641_v14, %v405_v48 }
  0xe9   : > { %v461_v52 = vpop.f32.mrf.mxu1 }
  0xea   : > { %v462_v55 = vadd.f32 %v461_v52, %v406_v51  ;;  %593 = vmatmul.f32.gmra.mxu3 %v297_v49  ;;  %646 = vmatmul.f32.gmra.mxu0 %v291_v50 }
  0xeb   : > { %1094 = vmatmul.msk.f32.gmra.mxu2 %vm333_vm0, %v293_v53 }
  0xec   : > { %702 = vmatmul.f32.gmra.mxu1 %v292_v54 }
  0xed   : > { %v482_v57 = vpop.f32.mrf.mxu3 }
  0xee   : > { %v483_v58 = vadd.f32 %v482_v57, %v427_v56  ;;  %v517_v59 = vpop.f32.mrf.mxu2 }
  0xef   : > { %v1674_v60 = vadd.f32 %v517_v59, %v462_v55  ;;  %v408_v61 = vpop.f32.mrf.mxu0 }
  0xf0   : > { %v409_v0 = vadd.f32 %v1641_v14, %v408_v61 }
  0xf1   : > { %v464_v1 = vpop.f32.mrf.mxu1 }
  0xf2   : > { %v465_v4 = vadd.f32 %v464_v1, %v409_v0  ;;  %596 = vmatmul.f32.gmra.mxu3 %v304_v62  ;;  %649 = vmatmul.f32.gmra.mxu0 %v298_v63 }
  0xf3   : > { %1095 = vmatmul.msk.f32.gmra.mxu2 %vm333_vm0, %v300_v2 }
  0xf4   : > { %705 = vmatmul.f32.gmra.mxu1 %v299_v3 }
  0xf5   : > { %v485_v6 = vpop.f32.mrf.mxu3 }
  0xf6   : > { %v486_v7 = vadd.f32 %v485_v6, %v430_v5  ;;  %v520_v8 = vpop.f32.mrf.mxu2 }
  0xf7   : > { %v1683_v9 = vadd.f32 %v520_v8, %v465_v4  ;;  %v411_v10 = vpop.f32.mrf.mxu0 }
  0xf8   : > { %v412_v13 = vadd.f32 %v1641_v14, %v411_v10 }
  0xf9   : > { %v467_v15 = vpop.f32.mrf.mxu1 }
  0xfa   : > { %v468_v18 = vadd.f32 %v467_v15, %v412_v13  ;;  %599 = vmatmul.f32.gmra.mxu3 %v311_v11  ;;  %652 = vmatmul.f32.gmra.mxu0 %v305_v12 }
  0xfb   : > { %1096 = vmatmul.msk.f32.gmra.mxu2 %vm333_vm0, %v307_v16 }
  0xfc   : > { %708 = vmatmul.f32.gmra.mxu1 %v306_v17 }
  0xfd   : > { %v488_v20 = vpop.f32.mrf.mxu3 }
  0xfe   : > { %v489_v21 = vadd.f32 %v488_v20, %v433_v19  ;;  %v523_v22 = vpop.f32.mrf.mxu2 }
  0xff   : > { %v1692_v23 = vadd.f32 %v523_v22, %v468_v18  ;;  %v414_v24 = vpop.f32.mrf.mxu0 }
 0x100   : > { %v415_v27 = vadd.f32 %v1641_v14, %v414_v24 }
 0x101   : > { %v470_v28 = vpop.f32.mrf.mxu1 }
 0x102   : > { %v471_v31 = vadd.f32 %v470_v28, %v415_v27  ;;  %655 = vmatmul.f32.gmra.mxu0 %v312_v26 }
 0x103   : > { %1097 = vmatmul.msk.f32.gmra.mxu2 %vm333_vm0, %v314_v29 }
 0x104   : > { %711 = vmatmul.f32.gmra.mxu1 %v313_v30 }
 0x105   : > { %v538_v32 = vpop.f32.mrf.mxu3 }
 0x106   : > { %v526_v33 = vpop.f32.mrf.mxu2  ;;  %v1699_v34 = vadd.f32 %v538_v32, %v483_v58 }
 0x107   : > { %v1701_v35 = vadd.f32 %v526_v33, %v471_v31  ;;  %v417_v37 = vpop.f32.mrf.mxu0 }
 0x108   : > { %v418_v38 = vadd.f32 %v1641_v14, %v417_v37 }
 0x109   : > { %v473_v39 = vpop.f32.mrf.mxu1 }
 0x10a   : > { %v474_v40 = vadd.f32 %v473_v39, %v418_v38 }
 0x10d   : > { %v541_v41 = vpop.f32.mrf.mxu3 }
 0x10e   : > { %v529_v42 = vpop.f32.mrf.mxu2  ;;  %v1704_v43 = vadd.f32 %v541_v41, %v486_v7 }
 0x10f   : > { %v1706_v44 = vadd.f32 %v529_v42, %v474_v40  ;;  %v420_v45 = vpop.f32.mrf.mxu0 }
 0x110   : > { %v421_v46 = vadd.f32 %v1641_v14, %v420_v45 }
 0x111   : > { %v476_v48 = vpop.f32.mrf.mxu1 }
 0x112   : > { %v477_v49 = vadd.f32 %v476_v48, %v421_v46 }
 0x115   : > { %v544_v50 = vpop.f32.mrf.mxu3 }
 0x116   : > { %v532_v51 = vpop.f32.mrf.mxu2  ;;  %v1709_v52 = vadd.f32 %v544_v50, %v489_v21 }
 0x117   : > { %v1711_v53 = vadd.f32 %v532_v51, %v477_v49  ;;  %v423_v54 = vpop.f32.mrf.mxu0 }
 0x118   : > { %v424_v55 = vadd.f32 %v1641_v14, %v423_v54 }
 0x119   : > { %v479_v56 = vpop.f32.mrf.mxu1 }
 0x11a   : > { %v480_v57 = vadd.f32 %v479_v56, %v424_v55 }
 0x11d   : > { %v564_v58 = vpop.f32.mrf.mxu3 }
 0x11e   : > { %v535_v59 = vpop.f32.mrf.mxu2  ;;  %v565_v61 = vadd.f32 %v564_v58, %v1649_v25 }
 0x11f   : > { %v1715_v62 = vadd.f32 %v535_v59, %v480_v57  ;;  %v620_v63 = vpop.f32.mrf.mxu0 }
 0x120   : > { %v621_v1 = vadd.f32 %v620_v63, %v565_v61 }
 0x121   : > { %v676_v0 = vpop.f32.mrf.mxu1 }
 0x122   : > { %v677_v2 = vadd.f32 %v676_v0, %v621_v1 }
 0x125   : > { %v567_v3 = vpop.f32.mrf.mxu3 }
 0x126   : > { %v568_v4 = vadd.f32 %v567_v3, %v1657_v36  ;;  %v732_v5 = vpop.f32.mrf.mxu2 }
 0x127   : > { %v733_v6 = vadd.f32 %v732_v5, %v677_v2  ;;  %v623_v14 = vpop.f32.mrf.mxu0 }
 0x128   : > { %v624_v25 = vadd.f32 %v623_v14, %v568_v4 }
 0x129   : > { %v679_v7 = vpop.f32.mrf.mxu1  ;;  %772 = vst.msk [vmem:[%s1719_s19] sm:$0xff] %vm771_vm1, %v733_v6 }
 0x12a   : > { %v680_v8 = vadd.f32 %v679_v7, %v624_v25 }
 0x12d   : > { %v570_v10 = vpop.f32.mrf.mxu3 }
 0x12e   : > { %v571_v11 = vadd.f32 %v570_v10, %v1665_v47  ;;  %v735_v12 = vpop.f32.mrf.mxu2 }
 0x12f   : > { %v736_v13 = vadd.f32 %v735_v12, %v680_v8  ;;  %v626_v36 = vpop.f32.mrf.mxu0 }
 0x130   : > { %v627_v16 = vadd.f32 %v626_v36, %v571_v11 }
 0x131   : > { %v682_v15 = vpop.f32.mrf.mxu1  ;;  %773 = vst.msk [vmem:[%s1719_s19 + $0x8] sm:$0xff] %vm771_vm1, %v736_v13 }
 0x132   : > { %v683_v17 = vadd.f32 %v682_v15, %v627_v16 }
 0x135   : > { %v573_v18 = vpop.f32.mrf.mxu3 }
 0x136   : > { %v574_v19 = vadd.f32 %v573_v18, %v1674_v60  ;;  %v738_v20 = vpop.f32.mrf.mxu2 }
 0x137   : > { %v739_v21 = vadd.f32 %v738_v20, %v683_v17  ;;  %v629_v22 = vpop.f32.mrf.mxu0 }
 0x138   : > { %v630_v26 = vadd.f32 %v629_v22, %v574_v19 }
 0x139   : > { %v685_v24 = vpop.f32.mrf.mxu1  ;;  %774 = vst.msk [vmem:[%s1719_s19 + $0x10] sm:$0xff] %vm771_vm1, %v739_v21 }
 0x13a   : > { %v686_v47 = vadd.f32 %v685_v24, %v630_v26 }
 0x13d   : > { %v576_v27 = vpop.f32.mrf.mxu3 }
 0x13e   : > { %v577_v28 = vadd.f32 %v576_v27, %v1683_v9  ;;  %v741_v29 = vpop.f32.mrf.mxu2 }
 0x13f   : > { %v742_v30 = vadd.f32 %v741_v29, %v686_v47  ;;  %v632_v31 = vpop.f32.mrf.mxu0 }
 0x140   : > { %v633_v33 = vadd.f32 %v632_v31, %v577_v28 }
 0x141   : > { %v688_v32 = vpop.f32.mrf.mxu1  ;;  %775 = vst.msk [vmem:[%s1719_s19 + $0x18] sm:$0xff] %vm771_vm1, %v742_v30 }
 0x142   : > { %v689_v60 = vadd.f32 %v688_v32, %v633_v33 }
 0x145   : > { %v579_v37 = vpop.f32.mrf.mxu3 }
 0x146   : > { %v580_v38 = vadd.f32 %v579_v37, %v1692_v23  ;;  %v744_v39 = vpop.f32.mrf.mxu2 }
 0x147   : > { %v745_v40 = vadd.f32 %v744_v39, %v689_v60  ;;  %v635_v41 = vpop.f32.mrf.mxu0 }
 0x148   : > { %v636_v45 = vadd.f32 %v635_v41, %v580_v38 }
 0x149   : > { %v691_v42 = vpop.f32.mrf.mxu1  ;;  %776 = vst.msk [vmem:[%s1719_s19 + $0x20] sm:$0xff] %vm771_vm1, %v745_v40 }
 0x14a   : > { %v692_v9 = vadd.f32 %v691_v42, %v636_v45 }
 0x14d   : > { %v582_v46 = vpop.f32.mrf.mxu3 }
 0x14e   : > { %v583_v48 = vadd.f32 %v582_v46, %v1701_v35  ;;  %v747_v49 = vpop.f32.mrf.mxu2 }
 0x14f   : > { %v748_v50 = vadd.f32 %v747_v49, %v692_v9  ;;  %v638_v51 = vpop.f32.mrf.mxu0 }
 0x150   : > { %v639_v55 = vadd.f32 %v638_v51, %v583_v48 }
 0x151   : > { %v694_v54 = vpop.f32.mrf.mxu1  ;;  %777 = vst.msk [vmem:[%s1719_s19 + $0x28] sm:$0xff] %vm771_vm1, %v748_v50 }
 0x152   : > { %v695_v23 = vadd.f32 %v694_v54, %v639_v55 }
 0x155   : > { %v585_v56 = vpop.f32.mrf.mxu3 }
 0x156   : > { %v586_v57 = vadd.f32 %v585_v56, %v1706_v44  ;;  %v750_v58 = vpop.f32.mrf.mxu2 }
 0x157   : > { %v751_v59 = vadd.f32 %v750_v58, %v695_v23  ;;  %v641_v61 = vpop.f32.mrf.mxu0 }
 0x158   : > { %v642_v0 = vadd.f32 %v641_v61, %v586_v57 }
 0x159   : > { %v697_v63 = vpop.f32.mrf.mxu1  ;;  %778 = vst.msk [vmem:[%s1719_s19 + $0x30] sm:$0xff] %vm771_vm1, %v751_v59 }
 0x15a   : > { %v698_v35 = vadd.f32 %v697_v63, %v642_v0 }
 0x15d   : > { %v588_v1 = vpop.f32.mrf.mxu3 }
 0x15e   : > { %v589_v2 = vadd.f32 %v588_v1, %v1711_v53  ;;  %v753_v3 = vpop.f32.mrf.mxu2 }
 0x15f   : > { %v754_v4 = vadd.f32 %v753_v3, %v698_v35  ;;  %v644_v5 = vpop.f32.mrf.mxu0 }
 0x160   : > { %v645_v14 = vadd.f32 %v644_v5, %v589_v2 }
 0x161   : > { %v700_v6 = vpop.f32.mrf.mxu1  ;;  %779 = vst.msk [vmem:[%s1719_s19 + $0x38] sm:$0xff] %vm771_vm1, %v754_v4 }
 0x162   : > { %v701_v44 = vadd.f32 %v700_v6, %v645_v14 }
 0x165   : > { %v591_v7 = vpop.f32.mrf.mxu3 }
 0x166   : > { %v592_v25 = vadd.f32 %v591_v7, %v1715_v62  ;;  %v756_v8 = vpop.f32.mrf.mxu2 }
 0x167   : > { %v757_v10 = vadd.f32 %v756_v8, %v701_v44  ;;  %v647_v11 = vpop.f32.mrf.mxu0 }
 0x168   : > { %v648_v13 = vadd.f32 %v647_v11, %v592_v25 }
 0x169   : > { %v703_v12 = vpop.f32.mrf.mxu1  ;;  %780 = vst.msk [vmem:[%s1719_s19 + $0x40] sm:$0xff] %vm771_vm1, %v757_v10 }
 0x16a   : > { %v704_v53 = vadd.f32 %v703_v12, %v648_v13 }
 0x16d   : > { %v594_v36 = vpop.f32.mrf.mxu3 }
 0x16e   : > { %v595_v15 = vadd.f32 %v594_v36, %v1699_v34  ;;  %v759_v16 = vpop.f32.mrf.mxu2 }
 0x16f   : > { %v760_v17 = vadd.f32 %v759_v16, %v704_v53  ;;  %v650_v18 = vpop.f32.mrf.mxu0 }
 0x170   : > { %v651_v20 = vadd.f32 %v650_v18, %v595_v15 }
 0x171   : > { %v706_v19 = vpop.f32.mrf.mxu1  ;;  %781 = vst.msk [vmem:[%s1719_s19 + $0x48] sm:$0xff] %vm771_vm1, %v760_v17 }
 0x172   : > { %v707_v62 = vadd.f32 %v706_v19, %v651_v20 }
 0x175   : > { %v597_v21 = vpop.f32.mrf.mxu3 }
 0x176   : > { %v598_v22 = vadd.f32 %v597_v21, %v1704_v43  ;;  %v762_v24 = vpop.f32.mrf.mxu2 }
 0x177   : > { %v763_v26 = vadd.f32 %v762_v24, %v707_v62  ;;  %v653_v47 = vpop.f32.mrf.mxu0 }
 0x178   : > { %v654_v34 = vadd.f32 %v653_v47, %v598_v22 }
 0x179   : > { %v709_v27 = vpop.f32.mrf.mxu1  ;;  %782 = vst.msk [vmem:[%s1719_s19 + $0x50] sm:$0xff] %vm771_vm1, %v763_v26 }
 0x17a   : > { %v710_v28 = vadd.f32 %v709_v27, %v654_v34 }
 0x17d   : > { %v600_v29 = vpop.f32.mrf.mxu3 }
 0x17e   : > { %v601_v30 = vadd.f32 %v600_v29, %v1709_v52  ;;  %v765_v31 = vpop.f32.mrf.mxu2 }
 0x17f   : > { %v766_v32 = vadd.f32 %v765_v31, %v710_v28  ;;  %v656_v33 = vpop.f32.mrf.mxu0 }
 0x180   : > { %v657_v60 = vadd.f32 %v656_v33, %v601_v30 }
 0x181   : > { %783 = vst.msk [vmem:[%s1719_s19 + $0x58] sm:$0xff] %vm771_vm1, %v766_v32  ;;  %v712_v37 = vpop.f32.mrf.mxu1 }
 0x182   : > { %v713_v43 = vadd.f32 %v712_v37, %v657_v60 }
 0x185   : > { %791 = sbr.rel (!%p1489_p10) target bundleno = 454 (0x1c6), region = 44 }
 0x186   : > { %v768_v38 = vpop.f32.mrf.mxu2 }
 0x187   : > { %v769_v39 = vadd.f32 %v768_v38, %v713_v43 }
 0x189   : > { %784 = vst.msk [vmem:[%s1719_s19 + $0x60] sm:$0xff] %vm771_vm1, %v769_v39 }
 0x18a   : > { %s1880_s30 = smov (!%p794_p8, %s793_s30), 13 }
 0x18b   : > { %s1098_s18 = sshll.u32 %s1880_s30, 3 }
 0x18c   : > { %p1101_p2 = scmp.eq.s32.totalorder %s1098_s18, 0 }
 0x18d   : > { %1236 = sdivrem.u32 (!%p1101_p2), %s1880_s30, 13 }
 0x18e   : > { %802 = sbr.rel (%p1101_p2) target bundleno = 454 (0x1c6), region = 48 }
 0x196   : > { %s1771_s23 = spop.drf %1236 }
 0x197   : > { %s1238_s21 = spop.drf %1236  ;;  %p1102_p10 = scmp.le.s32.totalorder %s1771_s23, 0 }
 0x198   : > { %s1866_s16 = smov (!%p1102_p10), %s1765_s11  ;;  %s1867_s27 = smov (!%p1102_p10), %s1719_s19 }
 0x199   : > { %1016 = sbr.rel (%p1102_p10) target bundleno = 428 (0x1ac), region = 130  ;;  %s1780_s28 = smov (!%p1102_p10), 0  }
 0x19a   : > { %s1782_s29 = smov (!%p1102_p10), 0  }
 0x19e LB: >> { %v891_v52 = vld [vmem:[%s1389_s27] sm:$0xff]  ;;  %v893_v40 = vld [vmem:[%s1389_s27 + $0x8] sm:$0xff]  ;;  %v895_v41 = vld [vmem:[%s1389_s27 + $0x10] sm:$0xff]  ;;  %s917_s4 = sadd.s32 1, %s1393_s28  ;;  %s885_s29 = sadd.s32 1, %s1397_s29   ;;  %s1397_s29 = sphi %s1782_s29, %s885_s29   ;;  %s1393_s28 = sphi %s1780_s28, %s1870_s28   ;;  %s1389_s27 = sphi %s1867_s27, %s1869_s27   ;;  %s1385_s16 = sphi %s1866_s16, %s1868_s16  }
 0x19f   : >> { %892 = vst [vmem:[%s1385_s16] sm:$0xff] %v891_v52  ;;  %v897_v42 = vld [vmem:[%s1389_s27 + $0x18] sm:$0xff]  ;;  %p918_p7 = scmp.ge.s32.totalorder %s917_s4, %s1771_s23  ;;  %v899_v45 = vld [vmem:[%s1389_s27 + $0x20] sm:$0xff]  ;;  %v901_v9 = vld [vmem:[%s1389_s27 + $0x28] sm:$0xff]  ;;  %p884_p9 = scmp.ge.s32.totalorder %s885_s29, %s1771_s23 }
 0x1a0   : >> { %894 = vst [vmem:[%s1385_s16 + $0x8] sm:$0xff] %v893_v40  ;;  %v903_v46 = vld [vmem:[%s1389_s27 + $0x30] sm:$0xff]  ;;  %v905_v48 = vld [vmem:[%s1389_s27 + $0x38] sm:$0xff]  ;;  %v907_v49 = vld [vmem:[%s1389_s27 + $0x40] sm:$0xff] }
 0x1a1   : >> { %896 = vst [vmem:[%s1385_s16 + $0x10] sm:$0xff] %v895_v41  ;;  %s1882_s4 = smov (%p918_p7, %s917_s4), 0  ;;  %v909_v50 = vld [vmem:[%s1389_s27 + $0x48] sm:$0xff]  ;;  %v911_v51 = vld [vmem:[%s1389_s27 + $0x50] sm:$0xff]  ;;  %v913_v54 = vld [vmem:[%s1389_s27 + $0x58] sm:$0xff] }
 0x1a2   : >> { %898 = vst [vmem:[%s1385_s16 + $0x18] sm:$0xff] %v897_v42  ;;  %s920_s15 = smul.u32 104, %s1882_s4  ;;  %v915_v55 = vld [vmem:[%s1389_s27 + $0x60] sm:$0xff]  ;;  %s1870_s28 = smov %s1882_s4 }
 0x1a3   : >> { %900 = vst [vmem:[%s1385_s16 + $0x20] sm:$0xff] %v899_v45 }
 0x1a4   : >> { %902 = vst [vmem:[%s1385_s16 + $0x28] sm:$0xff] %v901_v9  ;;  %s922_s5 = scalar_lea.vmem %s1719_s19, %s920_s15 [#allocation6]   ;;  %s923_s6 = scalar_lea.vmem %s1765_s11, %s920_s15  }
 0x1a5   : >> { %904 = vst [vmem:[%s1385_s16 + $0x30] sm:$0xff] %v903_v46  ;;  %s1869_s27 = smov %s922_s5 }
 0x1a6   : >> { %906 = vst [vmem:[%s1385_s16 + $0x38] sm:$0xff] %v905_v48 }
 0x1a7   : >> { %908 = vst [vmem:[%s1385_s16 + $0x40] sm:$0xff] %v907_v49  ;;  %887 = sbr.rel (!%p884_p9) target bundleno = 414 (0x19e), region = 136 }
 0x1a8   : >> { %910 = vst [vmem:[%s1385_s16 + $0x48] sm:$0xff] %v909_v50 }
 0x1a9   : >> { %912 = vst [vmem:[%s1385_s16 + $0x50] sm:$0xff] %v911_v51 }
 0x1aa   : >> { %914 = vst [vmem:[%s1385_s16 + $0x58] sm:$0xff] %v913_v54 }
 0x1ab   : >> { %916 = vst [vmem:[%s1385_s16 + $0x60] sm:$0xff] %v915_v55  ;;  %s1868_s16 = smov %s923_s6 }
 0x1ac PF: > { %1239 = sdivrem.u32 %s1880_s30, 13 }
 0x1ad   : > { %s1103_s7 = smul.u32 104, %s1771_s23 }
 0x1af   : > { %s1836_s8 = scalar_lea.vmem %s1719_s19, %s1103_s7 [#allocation6]   ;;  %s930_s22 = scalar_lea.vmem %s1765_s11, %s1103_s7  }
 0x1b5   : > { %s1240_s24 = spop.drf %1239 }
 0x1b6   : > { %s1241_s12 = spop.drf %1239 }
 0x1b7   : > { %p1105_p12 = scmp.le.s32.totalorder %s1241_s12, 0 }
 0x1b8   : > { %s1399_s25 = smov (!%p1105_p12), %s930_s22   ;;  %s1403_s26 = smov (!%p1105_p12), %s1836_s8  }
 0x1b9   : > { %1030 = sbr.rel (%p1105_p12) target bundleno = 454 (0x1c6), region = 141  ;;  %s1407_s9 = smov (!%p1105_p12), 0  }
 0x1ba   : > { %s1411_s10 = smov (!%p1105_p12), 0  }
 0x1be LB: >> { %v940_v23 = vld [vmem:[%s1405_s26] sm:$0xff]  ;;  %s942_s19 = sadd.s32 1, %s1409_s9  ;;  %s934_s10 = sadd.s32 1, %s1413_s10   ;;  %s1413_s10 = sphi %s1411_s10, %s934_s10   ;;  %s1409_s9 = sphi %s1407_s9, %s1408_s9   ;;  %s1405_s26 = sphi %s1403_s26, %s947_s26   ;;  %s1401_s25 = sphi %s1399_s25, %s948_s25  }
 0x1bf   : >> { %941 = vst [vmem:[%s1401_s25] sm:$0xff] %v940_v23  ;;  %p943_p13 = scmp.ge.s32.totalorder %s942_s19, %s1241_s12  ;;  %p933_p0 = scmp.ge.s32.totalorder %s934_s10, %s1241_s12 }
 0x1c1   : >> { %s1884_s19 = smov (%p943_p13, %s942_s19), 0  ;;  %936 = sbr.rel (!%p933_p0) target bundleno = 446 (0x1be), region = 147 }
 0x1c2   : >> { %s1106_s30 = sshll.u32 %s1884_s19, 3  ;;  %s1408_s9 = smov %s1884_s19  }
 0x1c3   : >> { %s947_s26 = scalar_lea.vmem %s1836_s8, %s1106_s30 [#allocation6]   ;;  %s948_s25 = scalar_lea.vmem %s930_s22, %s1106_s30  }
 0x1c6 PF: > { %p14_p1 = scmp.ge.s32.totalorder %s1463_s17, 4   ;;  %s1871_s12 = smov %s1373_s13 }
 0x1c7   : > { %s1872_s13 = smov %s1377_s14  ;;  %s1873_s14 = smov %s1473_s20 }
 0x1c8   : > { %s1874_s15 = smov %s1463_s17  ;;  %16 = sbr.rel (!%p14_p1) target bundleno = 4 (0x4), region = 158 }
 0x1cd   :  { %964 = vsyncpa [#allocation3], 1 }
 0x1ce   :  { %966 = vsyncpa [#allocation3 + $0x1], 1 }
 0x1cf   :  { %967 = vsyncpa [#allocation5], 1 }

</bundles_post_ra>
